<compile_context>
chip_gen: v6e
topology: v6e:2x2x1
jax: 0.10.0
libtpu: 0.0.40
codegen_flags: <defaults>
</compile_context>

<pallas_src>
import jax
import jax.numpy as jnp
from jax.experimental import pallas as pl
from jax.experimental.pallas import tpu as pltpu

LANE = 128
SUBLANE = 8


def _round_up(n, m):
    return ((n + m - 1) // m) * m


def dqn_kernel(x_ref,
               w1_ref, b1_ref,
               w2_ref, b2_ref,
               w3_ref, b3_ref,
               w4_ref, b4_ref,
               w5_ref, b5_ref,
               o_ref):
    def dense(h, w_ref, b_ref, relu):
        # MXU matmul with f32 accumulation; bias-add + ReLU stay in f32
        # (v5e's VPU has no bf16 elementwise support).
        out = jnp.dot(h, w_ref[...], preferred_element_type=jnp.float32)
        out = out + b_ref[...].astype(jnp.float32)
        if relu:
            out = jnp.maximum(out, 0.0)
            # Carry the inter-layer activation in the weight dtype (bf16 by
            # default): halves the live [tile_b,128] value between layers and
            # the spill/load-store slot pressure. Numerically identical to
            # casting on entry to the next matmul.
            return out.astype(w_ref.dtype)
        return out

    h = x_ref[...].astype(w1_ref.dtype)
    h = dense(h, w1_ref, b1_ref, True)   # Linear + ReLU (+ Dropout = identity)
    h = dense(h, w2_ref, b2_ref, True)
    h = dense(h, w3_ref, b3_ref, True)
    h = dense(h, w4_ref, b4_ref, True)
    o_ref[...] = dense(h, w5_ref, b5_ref, False).astype(o_ref.dtype)


def prepare_params(params, *, param_dtype=jnp.bfloat16, lane=LANE):
    """Pad + cast the parameters ONCE at init (hoisted out of the forward path).

    Each layer's output width (and the matching next-layer input rows) is
    zero-padded to a multiple of `lane` so all matmul N dims, bias+ReLU and the
    final store are lane-dense.  Zero columns + zero biases propagate exact
    zeros through ReLU and zero rows in the next layer cancel them, so the
    valid outputs are unchanged.  Weights are cast to `param_dtype`
    (bf16 by default: bf16 MXU path on v5e/v6e/v7x, f32 accumulation).
    """
    num_actions = int(params[-1][0].shape[1])
    in_dim = int(params[0][0].shape[0])
    padded = []
    prev_out_p = None
    for idx, (W, b) in enumerate(params):
        W = W.astype(param_dtype)
        b = b.astype(param_dtype)
        d_in, d_out = W.shape
        in_p = d_in if idx == 0 else prev_out_p
        out_p = _round_up(d_out, lane)
        Wp = jnp.zeros((in_p, out_p), param_dtype).at[:d_in, :d_out].set(W)
        bp = jnp.zeros((1, out_p), param_dtype).at[:, :d_out].set(b)
        padded.append((Wp, bp))
        prev_out_p = out_p
    return {
        "layers": padded,
        "num_actions": num_actions,
        "in_dim": in_dim,
        "dtype": jnp.dtype(param_dtype),
    }


def dqn_forward(x, prepared, *, tile_b=512, out_dtype=None):
    """x: [B, input_dim] float32.  prepared: output of prepare_params().

    Returns [B, num_actions] Q-values in `out_dtype` (defaults to the prepared
    parameter dtype, i.e. bf16 -> halves the padded output writeback stream).
    """
    B, in_dim = x.shape
    layers = prepared["layers"]
    num_actions = prepared["num_actions"]
    out_p = layers[-1][0].shape[1]
    if out_dtype is None:
        out_dtype = prepared["dtype"]
    out_dtype = jnp.dtype(out_dtype)

    # Cap the tile at ceil(B/2) (sublane-rounded) so there are always >=2 grid
    # steps when B > SUBLANE: the "parallel" batch axis can then be sharded
    # across v7x's two TensorCores instead of leaving one idle.  Remainder
    # rows are zero-padded, never dropped.
    tile_b = max(SUBLANE, min(tile_b, _round_up(-(-B // 2), SUBLANE)))
    B_pad = _round_up(B, tile_b)
    if B_pad != B:
        x = jnp.pad(x, ((0, B_pad - B), (0, 0)))
    grid = (B_pad // tile_b,)

    flat = []
    # Weights/biases use constant index_maps -> VMEM-resident across the grid.
    # Padded bf16 they total ~140 KiB, negligible vs. the scoped VMEM budget
    # (16/32 MiB default on v5e / v6e+v7x; v7x physical VMEM is 64 MiB).
    in_specs = [pl.BlockSpec((tile_b, in_dim), lambda i: (i, 0))]
    weight_bytes = 0
    for W, b in layers:
        flat.extend([W, b])
        in_specs.append(pl.BlockSpec(W.shape, lambda i: (0, 0)))
        in_specs.append(pl.BlockSpec(b.shape, lambda i: (0, 0)))
        weight_bytes += W.size * W.dtype.itemsize + b.size * b.dtype.itemsize

    # Advisory cost estimate (computed on padded dims -> overstates real work).
    flops = 2 * B_pad * sum(int(W.shape[0]) * int(W.shape[1]) for W, _ in layers)
    bytes_accessed = int(x.size * x.dtype.itemsize
                         + B_pad * out_p * out_dtype.itemsize
                         + weight_bytes)

    # Only raise the scoped-VMEM limit when a very large tile actually needs it
    # (stays within v5e's 16 MiB default for the default tile_b).
    vmem_bytes = int(2 * (tile_b * in_dim * x.dtype.itemsize
                          + tile_b * out_p * out_dtype.itemsize
                          + weight_bytes)
                     + 4 * tile_b * LANE * 4)
    compiler_kwargs = dict(dimension_semantics=("parallel",))
    if vmem_bytes > 12 * 1024 * 1024:
        compiler_kwargs["vmem_limit_bytes"] = min(2 * vmem_bytes, 48 * 1024 * 1024)

    out = pl.pallas_call(
        dqn_kernel,
        out_shape=jax.ShapeDtypeStruct((B_pad, out_p), out_dtype),
        grid_spec=pltpu.PrefetchScalarGridSpec(
            num_scalar_prefetch=0,
            grid=grid,
            in_specs=in_specs,
            out_specs=pl.BlockSpec((tile_b, out_p), lambda i: (i, 0)),
        ),
        compiler_params=pltpu.CompilerParams(**compiler_kwargs),
        cost_estimate=pl.CostEstimate(flops=flops, transcendentals=0,
                                      bytes_accessed=bytes_accessed),
    )(x, *flat)

    # Drop batch padding and the zero-padded action columns (lane-dense store in
    # the kernel; slicing is wrapper-side layout plumbing).
    return out[:B, :num_actions]


def init_params(key, input_dim, num_actions, hidden_dim=128):
    dims = [input_dim, hidden_dim, hidden_dim // 2, hidden_dim // 4,
            hidden_dim // 4, num_actions]
    params = []
    for i in range(5):
        key, kw, kb = jax.random.split(key, 3)
        bound = 1.0 / jnp.sqrt(dims[i])
        # stored as [in, out] (pre-transposed PyTorch Linear weight)
        W = jax.random.uniform(kw, (dims[i], dims[i + 1]), jnp.float32,
                               minval=-bound, maxval=bound)
        b = jax.random.uniform(kb, (1, dims[i + 1]), jnp.float32,
                               minval=-bound, maxval=bound)
        params.append((W, b))
    return params


def reference_forward(x, params, act_dtype=jnp.float32):
    """Pure-JAX reference mimicking the kernel's numerics: matmuls accumulate in
    f32, bias+ReLU in f32, inter-layer activations carried in `act_dtype`."""
    h = x.astype(act_dtype)
    for i, (W, b) in enumerate(params):
        h = jnp.dot(h, W.astype(act_dtype), preferred_element_type=jnp.float32)
        h = h + b.astype(jnp.float32)
        if i < len(params) - 1:
            h = jnp.maximum(h, 0.0).astype(act_dtype)
    return h


if __name__ == "__main__":
    key = jax.random.PRNGKey(0)
    input_dim, num_actions, hidden_dim = 32, 8, 128

    kx1, kx2, kp = jax.random.split(key, 3)
    params = init_params(kp, input_dim, num_actions, hidden_dim)

    # Parameters are padded/cast ONCE here (hoisted out of the forward path).
    prepared_f32 = prepare_params(params, param_dtype=jnp.float32)
    prepared_bf16 = prepare_params(params)  # bf16 default on all generations

    # Case 1: f32 path, small odd batch -> 2-step parallel grid (megacore),
    # batch zero-padded, output sliced back to [37, 8]; tight tolerance.
    x1 = jax.random.normal(kx1, (37, input_dim), jnp.float32)
    out1 = jax.block_until_ready(dqn_forward(x1, prepared_f32,
                                             out_dtype=jnp.float32))
    ref1 = reference_forward(x1, params, jnp.float32)
    assert out1.shape == (37, num_actions)
    assert out1.dtype == jnp.float32
    assert jnp.allclose(out1, ref1, atol=5e-4, rtol=5e-4), "case-1 (f32) mismatch"

    # Case 2: default bf16 weights + bf16 inter-layer activations + bf16 output
    # (looser tolerance reflects the bf16 storage of weights/activations).
    x2 = jax.random.normal(kx2, (200, input_dim), jnp.float32)
    out2 = jax.block_until_ready(dqn_forward(x2, prepared_bf16))
    ref2 = reference_forward(x2, params, jnp.bfloat16)
    assert out2.shape == (200, num_actions)
    assert out2.dtype == jnp.bfloat16
    assert jnp.allclose(out2.astype(jnp.float32), ref2.astype(jnp.float32),
                        atol=2e-2, rtol=2e-2), "case-2 (bf16) mismatch"

    print("KERNEL_OK")
</pallas_src>

<mosaic_0001>
module attributes {stable_mosaic.version = 11 : i64} {
  func.func @dqn_kernel(%arg0: i32, %arg1: memref<24x32xf32, #tpu.memory_space<vmem>>, %arg2: memref<32x128xf32, #tpu.memory_space<vmem>>, %arg3: memref<1x128xf32, #tpu.memory_space<vmem>>, %arg4: memref<128x128xf32, #tpu.memory_space<vmem>>, %arg5: memref<1x128xf32, #tpu.memory_space<vmem>>, %arg6: memref<128x128xf32, #tpu.memory_space<vmem>>, %arg7: memref<1x128xf32, #tpu.memory_space<vmem>>, %arg8: memref<128x128xf32, #tpu.memory_space<vmem>>, %arg9: memref<1x128xf32, #tpu.memory_space<vmem>>, %arg10: memref<128x128xf32, #tpu.memory_space<vmem>>, %arg11: memref<1x128xf32, #tpu.memory_space<vmem>>, %arg12: memref<24x128xf32, #tpu.memory_space<vmem>>) attributes {dimension_semantics = [#tpu.dimension_semantics<parallel>], iteration_bounds = array<i64: 2>, scalar_prefetch = 0 : i64, scratch_operands = 0 : i64, tpu.core_type = #tpu.core_type<tc>, window_params = [{transform_indices = @transform_0, window_bounds = array<i64: 24, 32>}, {pipeline_mode = #tpu.pipeline_mode<synchronous>, transform_indices = @transform_1, window_bounds = array<i64: 32, 128>}, {pipeline_mode = #tpu.pipeline_mode<synchronous>, transform_indices = @transform_2, window_bounds = array<i64: 1, 128>}, {pipeline_mode = #tpu.pipeline_mode<synchronous>, transform_indices = @transform_3, window_bounds = array<i64: 128, 128>}, {pipeline_mode = #tpu.pipeline_mode<synchronous>, transform_indices = @transform_4, window_bounds = array<i64: 1, 128>}, {pipeline_mode = #tpu.pipeline_mode<synchronous>, transform_indices = @transform_5, window_bounds = array<i64: 128, 128>}, {pipeline_mode = #tpu.pipeline_mode<synchronous>, transform_indices = @transform_6, window_bounds = array<i64: 1, 128>}, {pipeline_mode = #tpu.pipeline_mode<synchronous>, transform_indices = @transform_7, window_bounds = array<i64: 128, 128>}, {pipeline_mode = #tpu.pipeline_mode<synchronous>, transform_indices = @transform_8, window_bounds = array<i64: 1, 128>}, {pipeline_mode = #tpu.pipeline_mode<synchronous>, transform_indices = @transform_9, window_bounds = array<i64: 128, 128>}, {pipeline_mode = #tpu.pipeline_mode<synchronous>, transform_indices = @transform_10, window_bounds = array<i64: 1, 128>}, {transform_indices = @transform_11, window_bounds = array<i64: 24, 128>}]} {
    %c0 = arith.constant 0 : index
    %c0_0 = arith.constant 0 : index
    %0 = vector.load %arg1[%c0, %c0_0] : memref<24x32xf32, #tpu.memory_space<vmem>>, vector<24x32xf32>
    %c0_1 = arith.constant 0 : index
    %c0_2 = arith.constant 0 : index
    %1 = vector.load %arg2[%c0_1, %c0_2] : memref<32x128xf32, #tpu.memory_space<vmem>>, vector<32x128xf32>
    %cst = arith.constant dense<0.000000e+00> : vector<24x128xf32>
    %2 = tpu.matmul %0, %1, %cst {dimension_numbers = #tpu.dot_dimension_numbers<[1], [0], [0], [1], [0, 0, 1, 1], [], []>} : vector<24x32xf32>, vector<32x128xf32>, vector<24x128xf32> -> vector<24x128xf32>
    %c0_3 = arith.constant 0 : index
    %c0_4 = arith.constant 0 : index
    %3 = vector.load %arg3[%c0_3, %c0_4] : memref<1x128xf32, #tpu.memory_space<vmem>>, vector<1x128xf32>
    %4 = vector.broadcast %3 : vector<1x128xf32> to vector<24x128xf32>
    %5 = arith.addf %2, %4 : vector<24x128xf32>
    %cst_5 = arith.constant 0.000000e+00 : f32
    %6 = vector.broadcast %cst_5 : f32 to vector<24x128xf32>
    %7 = arith.maximumf %5, %6 : vector<24x128xf32>
    %c0_6 = arith.constant 0 : index
    %c0_7 = arith.constant 0 : index
    %8 = vector.load %arg4[%c0_6, %c0_7] : memref<128x128xf32, #tpu.memory_space<vmem>>, vector<128x128xf32>
    %cst_8 = arith.constant dense<0.000000e+00> : vector<24x128xf32>
    %9 = tpu.matmul %7, %8, %cst_8 {dimension_numbers = #tpu.dot_dimension_numbers<[1], [0], [0], [1], [0, 0, 1, 1], [], []>} : vector<24x128xf32>, vector<128x128xf32>, vector<24x128xf32> -> vector<24x128xf32>
    %c0_9 = arith.constant 0 : index
    %c0_10 = arith.constant 0 : index
    %10 = vector.load %arg5[%c0_9, %c0_10] : memref<1x128xf32, #tpu.memory_space<vmem>>, vector<1x128xf32>
    %11 = vector.broadcast %10 : vector<1x128xf32> to vector<24x128xf32>
    %12 = arith.addf %9, %11 : vector<24x128xf32>
    %cst_11 = arith.constant 0.000000e+00 : f32
    %13 = vector.broadcast %cst_11 : f32 to vector<24x128xf32>
    %14 = arith.maximumf %12, %13 : vector<24x128xf32>
    %c0_12 = arith.constant 0 : index
    %c0_13 = arith.constant 0 : index
    %15 = vector.load %arg6[%c0_12, %c0_13] : memref<128x128xf32, #tpu.memory_space<vmem>>, vector<128x128xf32>
    %cst_14 = arith.constant dense<0.000000e+00> : vector<24x128xf32>
    %16 = tpu.matmul %14, %15, %cst_14 {dimension_numbers = #tpu.dot_dimension_numbers<[1], [0], [0], [1], [0, 0, 1, 1], [], []>} : vector<24x128xf32>, vector<128x128xf32>, vector<24x128xf32> -> vector<24x128xf32>
    %c0_15 = arith.constant 0 : index
    %c0_16 = arith.constant 0 : index
    %17 = vector.load %arg7[%c0_15, %c0_16] : memref<1x128xf32, #tpu.memory_space<vmem>>, vector<1x128xf32>
    %18 = vector.broadcast %17 : vector<1x128xf32> to vector<24x128xf32>
    %19 = arith.addf %16, %18 : vector<24x128xf32>
    %cst_17 = arith.constant 0.000000e+00 : f32
    %20 = vector.broadcast %cst_17 : f32 to vector<24x128xf32>
    %21 = arith.maximumf %19, %20 : vector<24x128xf32>
    %c0_18 = arith.constant 0 : index
    %c0_19 = arith.constant 0 : index
    %22 = vector.load %arg8[%c0_18, %c0_19] : memref<128x128xf32, #tpu.memory_space<vmem>>, vector<128x128xf32>
    %cst_20 = arith.constant dense<0.000000e+00> : vector<24x128xf32>
    %23 = tpu.matmul %21, %22, %cst_20 {dimension_numbers = #tpu.dot_dimension_numbers<[1], [0], [0], [1], [0, 0, 1, 1], [], []>} : vector<24x128xf32>, vector<128x128xf32>, vector<24x128xf32> -> vector<24x128xf32>
    %c0_21 = arith.constant 0 : index
    %c0_22 = arith.constant 0 : index
    %24 = vector.load %arg9[%c0_21, %c0_22] : memref<1x128xf32, #tpu.memory_space<vmem>>, vector<1x128xf32>
    %25 = vector.broadcast %24 : vector<1x128xf32> to vector<24x128xf32>
    %26 = arith.addf %23, %25 : vector<24x128xf32>
    %cst_23 = arith.constant 0.000000e+00 : f32
    %27 = vector.broadcast %cst_23 : f32 to vector<24x128xf32>
    %28 = arith.maximumf %26, %27 : vector<24x128xf32>
    %c0_24 = arith.constant 0 : index
    %c0_25 = arith.constant 0 : index
    %29 = vector.load %arg10[%c0_24, %c0_25] : memref<128x128xf32, #tpu.memory_space<vmem>>, vector<128x128xf32>
    %cst_26 = arith.constant dense<0.000000e+00> : vector<24x128xf32>
    %30 = tpu.matmul %28, %29, %cst_26 {dimension_numbers = #tpu.dot_dimension_numbers<[1], [0], [0], [1], [0, 0, 1, 1], [], []>} : vector<24x128xf32>, vector<128x128xf32>, vector<24x128xf32> -> vector<24x128xf32>
    %c0_27 = arith.constant 0 : index
    %c0_28 = arith.constant 0 : index
    %31 = vector.load %arg11[%c0_27, %c0_28] : memref<1x128xf32, #tpu.memory_space<vmem>>, vector<1x128xf32>
    %32 = vector.broadcast %31 : vector<1x128xf32> to vector<24x128xf32>
    %33 = arith.addf %30, %32 : vector<24x128xf32>
    %c0_29 = arith.constant 0 : index
    %c0_30 = arith.constant 0 : index
    %34 = vector.load %arg12[%c0_29, %c0_30] : memref<24x128xf32, #tpu.memory_space<vmem>>, vector<24x128xf32>
    tpu.vector_store %arg12[%c0_29, %c0_30], %33 {strides = array<i32>} : memref<24x128xf32, #tpu.memory_space<vmem>>, vector<24x128xf32>,
    return
  }
  func.func @transform_0(%arg0: i32) -> (i32, i32) {
    %c0_i32 = arith.constant 0 : i32
    %c0_i32_0 = arith.constant 0 : i32
    return %arg0, %c0_i32 : i32, i32
  }
  func.func @transform_1(%arg0: i32) -> (i32, i32) {
    %c0_i32 = arith.constant 0 : i32
    %c0_i32_0 = arith.constant 0 : i32
    %c0_i32_1 = arith.constant 0 : i32
    return %c0_i32, %c0_i32_0 : i32, i32
  }
  func.func @transform_2(%arg0: i32) -> (i32, i32) {
    %c0_i32 = arith.constant 0 : i32
    %c0_i32_0 = arith.constant 0 : i32
    %c0_i32_1 = arith.constant 0 : i32
    return %c0_i32, %c0_i32_0 : i32, i32
  }
  func.func @transform_3(%arg0: i32) -> (i32, i32) {
    %c0_i32 = arith.constant 0 : i32
    %c0_i32_0 = arith.constant 0 : i32
    %c0_i32_1 = arith.constant 0 : i32
    return %c0_i32, %c0_i32_0 : i32, i32
  }
  func.func @transform_4(%arg0: i32) -> (i32, i32) {
    %c0_i32 = arith.constant 0 : i32
    %c0_i32_0 = arith.constant 0 : i32
    %c0_i32_1 = arith.constant 0 : i32
    return %c0_i32, %c0_i32_0 : i32, i32
  }
  func.func @transform_5(%arg0: i32) -> (i32, i32) {
    %c0_i32 = arith.constant 0 : i32
    %c0_i32_0 = arith.constant 0 : i32
    %c0_i32_1 = arith.constant 0 : i32
    return %c0_i32, %c0_i32_0 : i32, i32
  }
  func.func @transform_6(%arg0: i32) -> (i32, i32) {
    %c0_i32 = arith.constant 0 : i32
    %c0_i32_0 = arith.constant 0 : i32
    %c0_i32_1 = arith.constant 0 : i32
    return %c0_i32, %c0_i32_0 : i32, i32
  }
  func.func @transform_7(%arg0: i32) -> (i32, i32) {
    %c0_i32 = arith.constant 0 : i32
    %c0_i32_0 = arith.constant 0 : i32
    %c0_i32_1 = arith.constant 0 : i32
    return %c0_i32, %c0_i32_0 : i32, i32
  }
  func.func @transform_8(%arg0: i32) -> (i32, i32) {
    %c0_i32 = arith.constant 0 : i32
    %c0_i32_0 = arith.constant 0 : i32
    %c0_i32_1 = arith.constant 0 : i32
    return %c0_i32, %c0_i32_0 : i32, i32
  }
  func.func @transform_9(%arg0: i32) -> (i32, i32) {
    %c0_i32 = arith.constant 0 : i32
    %c0_i32_0 = arith.constant 0 : i32
    %c0_i32_1 = arith.constant 0 : i32
    return %c0_i32, %c0_i32_0 : i32, i32
  }
  func.func @transform_10(%arg0: i32) -> (i32, i32) {
    %c0_i32 = arith.constant 0 : i32
    %c0_i32_0 = arith.constant 0 : i32
    %c0_i32_1 = arith.constant 0 : i32
    return %c0_i32, %c0_i32_0 : i32, i32
  }
  func.func @transform_11(%arg0: i32) -> (i32, i32) {
    %c0_i32 = arith.constant 0 : i32
    %c0_i32_0 = arith.constant 0 : i32
    return %arg0, %c0_i32 : i32, i32
  }
}

</mosaic_0001>

<bundles_post_ra>
// kernel: tpu_custom_call.1
= control target key start
LH: loop header
LB: loop body
LE: loop exit
PB: predicated region body
PF: predicated region fallthrough
CT: control target
= control target key end

     0   :  { %16 = vsyncpa [#allocation3], 0  ;;  %s2027_s0 = inlined_call_operand.vmem [shape: f32[48,32], index: 0, kind: input, shape index: {}]   ;;  %s2028_s1 = inlined_call_operand.vmem [shape: f32[32,128], index: 1, kind: input, shape index: {}]   ;;  %s2029_s2 = inlined_call_operand.vmem [shape: f32[1,128], index: 2, kind: input, shape index: {}]   ;;  %s2030_s3 = inlined_call_operand.hbm [shape: f32[128,128], index: 3, kind: input, shape index: {}]   ;;  %s2031_s4 = inlined_call_operand.vmem [shape: f32[1,128], index: 4, kind: input, shape index: {}]   ;;  %s2032_s5 = inlined_call_operand.hbm [shape: f32[128,128], index: 5, kind: input, shape index: {}]   ;;  %s2033_s6 = inlined_call_operand.vmem [shape: f32[1,128], index: 6, kind: input, shape index: {}]   ;;  %s2034_s7 = inlined_call_operand.hbm [shape: f32[128,128], index: 7, kind: input, shape index: {}]   ;;  %s2035_s8 = inlined_call_operand.vmem [shape: f32[1,128], index: 8, kind: input, shape index: {}]   ;;  %s2036_s9 = inlined_call_operand.hbm [shape: f32[128,128], index: 9, kind: input, shape index: {}]   ;;  %s2037_s10 = inlined_call_operand.vmem [shape: f32[1,128], index: 10, kind: input, shape index: {}]   ;;  %s2038_s11 = inlined_call_operand.hbm [shape: f32[48,128], index: 11, kind: output, shape index: {}]  }
   0x1   :  { %17 = vsyncpa [#allocation6], 0 }
   0x2   :  { %18 = vsyncpa [#allocation9], 0 }
   0x3   :  { %19 = vsyncpa [#allocation4], 0 }
   0x4   :  { %21 = vsyncpa [#allocation4 + $0x1], 0  ;;  %s1720_s17 = smov 0   ;;  %s1722_s18 = smov 0  }
   0x5   :  { %s1724_s19 = smov 0   ;;  %s1726_s20 = smov 0  }
   0x6 LB: > { %2040 = sst [smem:[#allocation15_spill]] %s1643_s19  ;;  %s1741_s21 = sadd.s32 4294967295, %s1647_s20   ;;  %s1647_s20 = sphi %s1726_s20, %s2050_s20   ;;  %s1643_s19 = sphi %s1724_s19, %s2047_s19   ;;  %s1639_s18 = sphi %s1722_s18, %s2049_s18   ;;  %s1635_s17 = sphi %s1720_s17, %s2048_s17  }
   0x7   : > { %s1095_s22 = sadd.s32 4294967294, %s1647_s20   ;;  %s1745_s23 = sadd.s32 1, %s1647_s20  }
   0x8   : > { %s270_s24 = sadd.s32 1, %s1643_s19  ;;  %s267_s25 = ssub.s32 %s1647_s20, %s1745_s23 }
   0x9   : > { %p280_p0 = scmp.ne.s32.totalorder %s1643_s19, %s1639_s18  ;;  %p268_p1 = scmp.eq.s32.totalorder %s267_s25, 0 }
   0xa   : > { %p281_p2 = scmp.eq.s32.totalorder %s1741_s21, 1  ;;  %p286_p3 = scmp.ne.s32.totalorder %s1639_s18, %s1635_s17 }
   0xb   : > { %p287_p4 = scmp.eq.s32.totalorder %s1095_s22, 1  ;;  %p1096_p7 = scmp.ge.s32.totalorder %s1647_s20, 1 }
   0xc   : > { %s1756_s26 = scalar_select %p268_p1, %s1643_s19, %s270_s24  }
   0xd   : > { %p1758_p5 = por %p281_p2, %p280_p0  ;;  %p1762_p6 = por %p287_p4, %p286_p3 }
   0xe   : > { %2041 = sst [smem:[#allocation16_spill]] %s1756_s26  ;;  %p294_p8 = scmp.lt.s32.totalorder %s1647_s20, 3 }
   0xf   : > { %p1420_p9 = scmp.eq.s32.totalorder %s1741_s21, 0  ;;  %s1649_s30 = smov [#allocation5]  }
  0x10   : > { %p1769_p10 = pnand %p1096_p7, %p294_p8  ;;  %s328_s12 = sshll.u32 %s1649_s30, 4  ;;  %s329_s12 = int_to_ptr.vmem [resolvable:$true] %s328_s12 }
  0x11   : > { %s1650_s14 = smov [#allocation2]   ;;  %s1651_s16 = smov [#allocation7]  }
  0x12   : > { %p1403_p11 = pneg %p1769_p10  ;;  %s312_s15 = sshll.u32 %s1650_s14, 4  ;;  %s313_s15 = int_to_ptr.vmem [resolvable:$true] %s312_s15 }
  0x13   : > { %s344_s22 = sshll.u32 %s1651_s16, 4  ;;  %s1482_s24 = scalar_lea.vmem %s329_s12, 2048  ;;  %s345_s22 = int_to_ptr.vmem [resolvable:$true] %s344_s22 }
  0x14   : > { %p1777_p12 = pnand %p1420_p9, %p1403_p11  ;;  %p1483_p0 = scmp.ne.s32.totalorder %s329_s12, %s1482_s24 }
  0x15   : > { %p1490_p3 = scmp.lt.s32.totalorder %s329_s12, %s329_s12  ;;  %p1491_p4 = scmp.lt.s32.totalorder %s1482_s24, %s1482_s24 }
  0x16   : > { %p1473_p13 = pneg %p1777_p12 }
  0x17   : > { %p1492_p7 = por %p1491_p4, %p1490_p3 }
  0x18   : > { %p1485_p1 = pnand %p1483_p0, %p1473_p13 }
  0x1a   : > { %p1486_p2 = pneg %p1485_p1 }
  0x1c   : > { %p1493_p8 = pnand %p1492_p7, %p1486_p2 }
  0x1e   : > { %1496 = shalt.err (!%p1493_p8)
}
  0x1f   : > { %s1652_s25 = smov 128   ;;  %s1653_s30 = smov 8  }
  0x20   : > { %1409 = dma.hbm_to_vmem [thread:$0]  (!%p1777_p12), %s2032_s5, 2048, %s329_s12, [#allocation6], %s1652_s25, %s1652_s25, %s1653_s30  }
  0x21   : > { %s1508_s26 = scalar_lea.vmem %s313_s15, 2048  ;;  %p1516_p2 = scmp.lt.s32.totalorder %s313_s15, %s313_s15 }
  0x22   : > { %p1509_p11 = scmp.ne.s32.totalorder %s313_s15, %s1508_s26  ;;  %p1517_p3 = scmp.lt.s32.totalorder %s1508_s26, %s1508_s26 }
  0x24   : > { %p1511_p0 = pnand %p1509_p11, %p1473_p13  ;;  %p1518_p4 = por %p1517_p3, %p1516_p2 }
  0x26   : > { %p1512_p1 = pneg %p1511_p0 }
  0x28   : > { %p1519_p7 = pnand %p1518_p4, %p1512_p1 }
  0x2a   : > { %1522 = shalt.err (!%p1519_p7)
}
  0x2b   : > { %1406 = dma.hbm_to_vmem [thread:$0]  (!%p1777_p12), %s2030_s3, 2048, %s313_s15, [#allocation3], %s1652_s25, %s1652_s25, %s1653_s30  }
  0x2c   : > { %s1534_s12 = scalar_lea.vmem %s345_s22, 2048  ;;  %p1542_p2 = scmp.lt.s32.totalorder %s345_s22, %s345_s22 }
  0x2d   : > { %p1535_p8 = scmp.ne.s32.totalorder %s345_s22, %s1534_s12  ;;  %p1543_p1 = scmp.lt.s32.totalorder %s1534_s12, %s1534_s12 }
  0x2f   : > { %p1537_p11 = pnand %p1535_p8, %p1473_p13  ;;  %p1544_p3 = por %p1543_p1, %p1542_p2 }
  0x31   : > { %p1538_p0 = pneg %p1537_p11 }
  0x33   : > { %p1545_p4 = pnand %p1544_p3, %p1538_p0 }
  0x35   : > { %1548 = shalt.err (!%p1545_p4)
}
  0x36   : > { %1412 = dma.hbm_to_vmem [thread:$0]  (!%p1777_p12), %s2034_s7, 2048, %s345_s22, [#allocation6], %s1652_s25, %s1652_s25, %s1653_s30  }
  0x37   : > { %s1654_s15 = smov [#allocation8]  }
  0x38   : > { %s360_s14 = sshll.u32 %s1654_s15, 4  ;;  %s361_s14 = int_to_ptr.vmem [resolvable:$true] %s360_s14 }
  0x39   : > { %s1560_s16 = scalar_lea.vmem %s361_s14, 2048  ;;  %p1568_p0 = scmp.lt.s32.totalorder %s361_s14, %s361_s14 }
  0x3a   : > { %p1561_p7 = scmp.ne.s32.totalorder %s361_s14, %s1560_s16  ;;  %p1569_p2 = scmp.lt.s32.totalorder %s1560_s16, %s1560_s16 }
  0x3c   : > { %p1563_p8 = pnand %p1561_p7, %p1473_p13  ;;  %p1570_p1 = por %p1569_p2, %p1568_p0 }
  0x3e   : > { %p1564_p11 = pneg %p1563_p8 }
  0x40   : > { %p1571_p3 = pnand %p1570_p1, %p1564_p11 }
  0x42   : > { %1574 = shalt.err (!%p1571_p3)
}
  0x43   : > { %1415 = dma.hbm_to_vmem [thread:$0]  (!%p1777_p12), %s2036_s9, 2048, %s361_s14, [#allocation9], %s1652_s25, %s1652_s25, %s1653_s30  }
  0x44   : > { %388 = sbr.rel (%p1769_p10) target bundleno = 1093 (0x445), region = 64 }
  0x49   : > { %1618 = dma.done.wait (%p1420_p9), [#allocation3], 2048  }
  0x4a   : > { %1620 = vsyncadd (%p1420_p9), [#allocation3], 4294965248 }
  0x4b   : > { %1622 = dma.done.wait (%p1420_p9), [#allocation6], 4096  }
  0x4c   : > { %1624 = vsyncadd (%p1420_p9), [#allocation6], 4294963200 }
  0x4d   : > { %1626 = dma.done.wait (%p1420_p9), [#allocation9], 2048  }
  0x4e   : > { %1628 = vsyncadd (%p1420_p9), [#allocation9], 4294965248  ;;  %s440_s29 = smul.u32 3, %s1741_s21  ;;  %v1655_v0 = vmov 0.0   ;;  %vm1656_vm0 = vmmov 0   ;;  %v453_v1 = vld [vmem:[%s2028_s1 + $0x18] sm:$0xff] }
  0x4f   : > { %1203 = vmatprep.subr.mxu0 %v1655_v0  ;;  %1211 = vmatprep.mubr.msk.f32.mxu0 %vm1656_vm0, %v1655_v0  ;;  %v452_v2 = vld [vmem:[%s2028_s1 + $0x10] sm:$0xff]  ;;  %v451_v3 = vld [vmem:[%s2028_s1 + $0x8] sm:$0xff]  ;;  %v569_v4 = vld [vmem:[#allocation2 + $0x78] sm:$0xff]  ;;  %vm461_vm1 = vcmask 261120   ;;  %s437_s16 = sand.u32 1, %s1639_s18   ;;  %s1119_s25 = smul.u32 384, %s1741_s21 }
  0x50   : > { %p441_p10 = scmp.lt.s32.totalorder %s440_s29, 5  ;;  %1220 = vmatprep.subr.mxu1 %v1655_v0  ;;  %1252 = vmatprep.mubr.msk.f32.mxu1 %vm1656_vm0, %v1655_v0  ;;  %v568_v5 = vld [vmem:[#allocation2 + $0x70] sm:$0xff]  ;;  %v450_v6 = vld [vmem:[%s2028_s1] sm:$0xff]  ;;  %v567_v7 = vld [vmem:[#allocation2 + $0x68] sm:$0xff]  ;;  %s1987_s15 = scalar_lea.sflag [#allocation4], %s437_s16 }
  0x51   : > { %1204 = vmatpush3.msra.mxu0 %v453_v1  ;;  %1221 = vmatpush3.msra.mxu1 %v569_v4  ;;  %v566_v9 = vld [vmem:[#allocation2 + $0x60] sm:$0xff]  ;;  %v565_v10 = vld [vmem:[#allocation2 + $0x58] sm:$0xff]  ;;  %v564_v12 = vld [vmem:[#allocation2 + $0x50] sm:$0xff]  ;;  %s1985_s26 = scalar_lea.hbm %s2038_s11, %s1119_s25  ;;  %s1657_s14 = smov [#allocation10]  }
  0x52   : > { %s2052_s29 = smov (!%p441_p10, %s440_s29), 5  ;;  %1205 = vmatprep.subr.mxu0 %v1655_v0  ;;  %1222 = vmatprep.subr.mxu1 %v1655_v0  ;;  %v563_v13 = vld [vmem:[#allocation2 + $0x48] sm:$0xff]  ;;  %v562_v15 = vld [vmem:[#allocation2 + $0x40] sm:$0xff]  ;;  %v561_v16 = vld [vmem:[#allocation2 + $0x38] sm:$0xff] }
  0x53   : > { %s1107_s13 = sshll.u32 %s2052_s29, 3  ;;  %1206 = vmatpush3.msra.mxu0 %v452_v2  ;;  %1223 = vmatpush3.msra.mxu1 %v568_v5  ;;  %v560_v17 = vld [vmem:[#allocation2 + $0x30] sm:$0xff]  ;;  %v559_v18 = vld [vmem:[#allocation2 + $0x28] sm:$0xff]  ;;  %v558_v19 = vld [vmem:[#allocation2 + $0x20] sm:$0xff] }
  0x54   : > { %s1861_s22 = scalar_lea.vmem %s2027_s0, %s1107_s13  ;;  %1207 = vmatprep.subr.mxu0 %v1655_v0  ;;  %1224 = vmatprep.subr.mxu1 %v1655_v0  ;;  %v557_v20 = vld [vmem:[#allocation2 + $0x18] sm:$0xff]  ;;  %v556_v21 = vld [vmem:[#allocation2 + $0x10] sm:$0xff]  ;;  %v555_v22 = vld [vmem:[#allocation2 + $0x8] sm:$0xff] }
  0x55   : > { %1208 = vmatpush3.msra.mxu0 %v451_v3  ;;  %v447_v8 = vld [vmem:[%s1861_s22] sm:$0xff]  ;;  %1225 = vmatpush3.msra.mxu1 %v567_v7  ;;  %v448_v11 = vld [vmem:[%s1861_s22 + $0x8] sm:$0xff]  ;;  %v449_v14 = vld [vmem:[%s1861_s22 + $0x10] sm:$0xff]  ;;  %s1384_s22 = smul.u32 24, %s437_s16 }
  0x56   : > { %1209 = vmatprep.subr.mxu0 %v1655_v0  ;;  %1226 = vmatprep.subr.mxu1 %v1655_v0  ;;  %v554_v23 = vld [vmem:[#allocation2] sm:$0xff]  ;;  %v675_v24 = vld [vmem:[#allocation5 + $0x78] sm:$0xff]  ;;  %v674_v25 = vld [vmem:[#allocation5 + $0x70] sm:$0xff] }
  0x57   : > { %1210 = vmatpush3.msra.mxu0 %v450_v6  ;;  %1227 = vmatpush3.msra.mxu1 %v566_v9  ;;  %v673_v26 = vld [vmem:[#allocation5 + $0x68] sm:$0xff]  ;;  %v672_v27 = vld [vmem:[#allocation5 + $0x60] sm:$0xff]  ;;  %v671_v28 = vld [vmem:[#allocation5 + $0x58] sm:$0xff]  ;;  %s439_s13 = scalar_lea.vmem [#allocation10], %s1384_s22  ;;  %s1579_s22 = sshll.u32 %s1657_s14, 4  ;;  %s1580_s22 = int_to_ptr.vmem [resolvable:$false] %s1579_s22 }
  0x58   : > { %1212 = vmatmul.mubr.msk.f32.vlgmr.msra.gmra.mxu0 %vm461_vm1, %v447_v8  ;;  %1228 = vmatprep.subr.mxu1 %v1655_v0  ;;  %v670_v29 = vld [vmem:[#allocation5 + $0x50] sm:$0xff]  ;;  %v669_v30 = vld [vmem:[#allocation5 + $0x48] sm:$0xff]  ;;  %v668_v31 = vld [vmem:[#allocation5 + $0x40] sm:$0xff]  ;;  %s992_s30 = sshll.u32 %s439_s13, 4  ;;  %s1581_s24 = scalar_lea.vmem %s1580_s22, 768  ;;  %s1980_s30 = int_to_ptr.vmem [resolvable:$true] %s992_s30 }
  0x59   : > { %1214 = vmatprep.mubr.msk.f32.mxu0 %vm1656_vm0, %v1655_v0  ;;  %1261 = vmatprep.subr.mxu0 %v1655_v0  ;;  %v667_v32 = vld [vmem:[#allocation5 + $0x38] sm:$0xff]  ;;  %v666_v33 = vld [vmem:[#allocation5 + $0x30] sm:$0xff]  ;;  %v665_v34 = vld [vmem:[#allocation5 + $0x28] sm:$0xff]  ;;  %s1575_s21 = scalar_lea.vmem %s1980_s30, 384  ;;  %p1582_p4 = scmp.lt.s32.totalorder %s1980_s30, %s1580_s22 }
  0x5a   : > { %1229 = vmatpush3.msra.mxu1 %v565_v10  ;;  %1262 = vmatpush3.msra.mxu0 %v675_v24  ;;  %v664_v35 = vld [vmem:[#allocation5 + $0x20] sm:$0xff]  ;;  %v663_v36 = vld [vmem:[#allocation5 + $0x18] sm:$0xff]  ;;  %v662_v50 = vld [vmem:[#allocation5 + $0x10] sm:$0xff]  ;;  %p1576_p9 = scmp.ne.s32.totalorder %s1980_s30, %s1575_s21  ;;  %p1583_p7 = scmp.lt.s32.totalorder %s1581_s24, %s1575_s21 }
  0x5b   : > { %1230 = vmatprep.subr.mxu1 %v1655_v0  ;;  %1263 = vmatprep.subr.mxu0 %v1655_v0  ;;  %v1108_v37 = vld [vmem:[%s2029_s2] ss:$0 sm:$0xff]  ;;  %v661_v51 = vld [vmem:[#allocation5 + $0x8] sm:$0xff]  ;;  %v781_v53 = vld [vmem:[#allocation7 + $0x78] sm:$0xff] }
  0x5c   : > { %1215 = vmatmul.mubr.msk.f32.gmra.mxu0 %vm461_vm1, %v448_v11  ;;  %1231 = vmatpush3.msra.mxu1 %v564_v12  ;;  %v660_v52 = vld [vmem:[#allocation5] sm:$0xff]  ;;  %v780_v54 = vld [vmem:[#allocation7 + $0x70] sm:$0xff]  ;;  %v779_v55 = vld [vmem:[#allocation7 + $0x68] sm:$0xff]  ;;  %p1577_p12 = pnand %p1576_p9, %p1758_p5  ;;  %p1584_p8 = por %p1583_p7, %p1582_p4 }
  0x5d   : > { %1217 = vmatprep.mubr.msk.f32.mxu0 %vm1656_vm0, %v1655_v0  ;;  %1232 = vmatprep.subr.mxu1 %v1655_v0  ;;  %v778_v56 = vld [vmem:[#allocation7 + $0x60] sm:$0xff]  ;;  %v777_v57 = vld [vmem:[#allocation7 + $0x58] sm:$0xff]  ;;  %v776_v58 = vld [vmem:[#allocation7 + $0x50] sm:$0xff] }
  0x5e   : > { %1233 = vmatpush3.msra.mxu1 %v563_v13  ;;  %1264 = vmatpush3.msra.mxu0 %v674_v25  ;;  %v775_v59 = vld [vmem:[#allocation7 + $0x48] sm:$0xff]  ;;  %v774_v60 = vld [vmem:[#allocation7 + $0x40] sm:$0xff]  ;;  %v773_v61 = vld [vmem:[#allocation7 + $0x38] sm:$0xff]  ;;  %p1578_p13 = pneg %p1577_p12 }
  0x5f   : > { %1234 = vmatprep.subr.mxu1 %v1655_v0  ;;  %1265 = vmatprep.subr.mxu0 %v1655_v0  ;;  %v772_v62 = vld [vmem:[#allocation7 + $0x30] sm:$0xff]  ;;  %v771_v63 = vld [vmem:[#allocation7 + $0x28] sm:$0xff]  ;;  %v770_v1 = vld [vmem:[#allocation7 + $0x20] sm:$0xff] }
  0x60   : > { %1218 = vmatmul.mubr.msk.f32.gmra.mxu0 %vm461_vm1, %v449_v14  ;;  %1235 = vmatpush3.msra.mxu1 %v562_v15  ;;  %v769_v2 = vld [vmem:[#allocation7 + $0x18] sm:$0xff]  ;;  %v1112_v3 = vld [vmem:[%s2031_s4] ss:$0 sm:$0xff]  ;;  %v882_v24 = vld [vmem:[#allocation8 + $0x50] sm:$0xff]  ;;  %p1585_p11 = pnand %p1584_p8, %p1578_p13 }
  0x61   : > { %1293 = vmatprep.mubr.msk.f32.mxu0 %vm1656_vm0, %v1655_v0  ;;  %1236 = vmatprep.subr.mxu1 %v1655_v0  ;;  %v881_v25 = vld [vmem:[#allocation8 + $0x48] sm:$0xff] }
  0x62   : > { %1237 = vmatpush3.msra.mxu1 %v561_v16  ;;  %1266 = vmatpush3.msra.mxu0 %v673_v26  ;;  %v768_v16 = vld [vmem:[#allocation7 + $0x10] sm:$0xff]  ;;  %v880_v26 = vld [vmem:[#allocation8 + $0x40] sm:$0xff] }
  0x63   : > { %1238 = vmatprep.subr.mxu1 %v1655_v0  ;;  %1267 = vmatprep.subr.mxu0 %v1655_v0 }
  0x64   : > { %1239 = vmatpush3.msra.mxu1 %v560_v17  ;;  %1268 = vmatpush3.msra.mxu0 %v672_v27  ;;  %v767_v17 = vld [vmem:[#allocation7 + $0x8] sm:$0xff]  ;;  %v879_v27 = vld [vmem:[#allocation8 + $0x38] sm:$0xff] }
  0x65   : > { %1240 = vmatprep.subr.mxu1 %v1655_v0  ;;  %1269 = vmatprep.subr.mxu0 %v1655_v0 }
  0x66   : > { %1241 = vmatpush3.msra.mxu1 %v559_v18  ;;  %1270 = vmatpush3.msra.mxu0 %v671_v28  ;;  %v766_v18 = vld [vmem:[#allocation7] sm:$0xff]  ;;  %v878_v28 = vld [vmem:[#allocation8 + $0x30] sm:$0xff] }
  0x67   : > { %1242 = vmatprep.subr.mxu1 %v1655_v0  ;;  %1271 = vmatprep.subr.mxu0 %v1655_v0 }
  0x68   : > { %1243 = vmatpush3.msra.mxu1 %v558_v19  ;;  %1272 = vmatpush3.msra.mxu0 %v670_v29  ;;  %v887_v19 = vld [vmem:[#allocation8 + $0x78] sm:$0xff]  ;;  %v877_v29 = vld [vmem:[#allocation8 + $0x28] sm:$0xff] }
  0x69   : > { %1244 = vmatprep.subr.mxu1 %v1655_v0  ;;  %1273 = vmatprep.subr.mxu0 %v1655_v0 }
  0x6a   : > { %1245 = vmatpush3.msra.mxu1 %v557_v20  ;;  %1274 = vmatpush3.msra.mxu0 %v669_v30  ;;  %v886_v20 = vld [vmem:[#allocation8 + $0x70] sm:$0xff]  ;;  %v876_v30 = vld [vmem:[#allocation8 + $0x20] sm:$0xff] }
  0x6b   : > { %1246 = vmatprep.subr.mxu1 %v1655_v0  ;;  %1275 = vmatprep.subr.mxu0 %v1655_v0 }
  0x6c   : > { %1247 = vmatpush3.msra.mxu1 %v556_v21  ;;  %1276 = vmatpush3.msra.mxu0 %v668_v31  ;;  %v885_v21 = vld [vmem:[#allocation8 + $0x68] sm:$0xff]  ;;  %v875_v31 = vld [vmem:[#allocation8 + $0x18] sm:$0xff] }
  0x6d   : > { %1248 = vmatprep.subr.mxu1 %v1655_v0  ;;  %1277 = vmatprep.subr.mxu0 %v1655_v0 }
  0x6e   : > { %1249 = vmatpush3.msra.mxu1 %v555_v22  ;;  %1278 = vmatpush3.msra.mxu0 %v667_v32  ;;  %v884_v22 = vld [vmem:[#allocation8 + $0x60] sm:$0xff] }
  0x6f   : > { %1250 = vmatprep.subr.mxu1 %v1655_v0  ;;  %1279 = vmatprep.subr.mxu0 %v1655_v0  ;;  %v1113_v32 = vld [vmem:[%s2033_s6] ss:$0 sm:$0xff] }
  0x70   : > { %1251 = vmatpush3.msra.mxu1 %v554_v23  ;;  %1280 = vmatpush3.msra.mxu0 %v666_v33  ;;  %v883_v23 = vld [vmem:[#allocation8 + $0x58] sm:$0xff] }
  0x71   : > { %1302 = vmatprep.subr.mxu1 %v1655_v0  ;;  %1281 = vmatprep.subr.mxu0 %v1655_v0 }
  0x72   : > { %1282 = vmatpush3.msra.mxu0 %v665_v34 }
  0x73   : > { %1283 = vmatprep.subr.mxu0 %v1655_v0 }
  0x74   : > { %1284 = vmatpush3.msra.mxu0 %v664_v35 }
  0x75   : > { %1285 = vmatprep.subr.mxu0 %v1655_v0 }
  0x76   : > { %1286 = vmatpush3.msra.mxu0 %v663_v36 }
  0x77   : > { %1287 = vmatprep.subr.mxu0 %v1655_v0 }
  0x78   : > { %1288 = vmatpush3.msra.mxu0 %v662_v50 }
  0x79   : > { %1289 = vmatprep.subr.mxu0 %v1655_v0 }
  0x7a   : > { %1290 = vmatpush3.msra.mxu0 %v661_v51 }
  0x7b   : > { %1291 = vmatprep.subr.mxu0 %v1655_v0 }
  0x7c   : > { %1292 = vmatpush3.msra.mxu0 %v660_v52 }
  0x7d   : > { %1343 = vmatprep.subr.mxu0 %v1655_v0 }
 0x118   : > { %v537_v38 = vpop.f32.mrf.mxu0 }
 0x119   : > { %v538_v39 = vadd.f32 %v1108_v37, %v537_v38 }
 0x11a   : > { %v1213_v40 = vpop.f32.mrf.mxu0 }
 0x11b   : > { %v551_v41 = vmax.f32 %v538_v39, 0.0 }
 0x11c   : > { %v542_v42 = vpop.f32.mrf.mxu0 }
 0x11d   : > { %v543_v43 = vadd.f32 %v1108_v37, %v542_v42  ;;  %1253 = vmatmul.mubr.f32.vlgmr.msra.gmra.mxu1 %v551_v41 }
 0x11e   : > { %v1216_v44 = vpop.f32.mrf.mxu0  ;;  %1255 = vmatprep.mubr.msk.f32.mxu1 %vm1656_vm0, %v1655_v0  ;;  %1303 = vmatpush3.msra.mxu1 %v781_v53 }
 0x11f   : > { %v552_v45 = vmax.f32 %v543_v43, 0.0  ;;  %1304 = vmatprep.subr.mxu1 %v1655_v0 }
 0x120   : > { %v547_v46 = vpop.f32.mrf.mxu0  ;;  %1305 = vmatpush3.msra.mxu1 %v780_v54 }
 0x121   : > { %v548_v47 = vadd.f32 %v1108_v37, %v547_v46  ;;  %1256 = vmatmul.mubr.f32.gmra.mxu1 %v552_v45  ;;  %1306 = vmatprep.subr.mxu1 %v1655_v0  ;;  %v874_v45 = vld [vmem:[#allocation8 + $0x10] sm:$0xff]  ;;  %v873_v46 = vld [vmem:[#allocation8 + $0x8] sm:$0xff] }
 0x122   : > { %v1219_v48 = vpop.f32.mrf.mxu0  ;;  %1258 = vmatprep.mubr.msk.f32.mxu1 %vm1656_vm0, %v1655_v0  ;;  %1307 = vmatpush3.msra.mxu1 %v779_v55 }
 0x123   : > { %v553_v49 = vmax.f32 %v548_v47, 0.0  ;;  %1308 = vmatprep.subr.mxu1 %v1655_v0  ;;  %v872_v47 = vld [vmem:[#allocation8] sm:$0xff] }
 0x124   : > { %1309 = vmatpush3.msra.mxu1 %v778_v56  ;;  %v1114_v48 = vld [vmem:[%s2035_s8] ss:$0 sm:$0xff] }
 0x125   : > { %1259 = vmatmul.mubr.f32.gmra.mxu1 %v553_v49  ;;  %1310 = vmatprep.subr.mxu1 %v1655_v0 }
 0x126   : > { %1334 = vmatprep.mubr.msk.f32.mxu1 %vm1656_vm0, %v1655_v0  ;;  %1311 = vmatpush3.msra.mxu1 %v777_v57 }
 0x127   : > { %1312 = vmatprep.subr.mxu1 %v1655_v0 }
 0x128   : > { %1313 = vmatpush3.msra.mxu1 %v776_v58 }
 0x129   : > { %1314 = vmatprep.subr.mxu1 %v1655_v0 }
 0x12a   : > { %1315 = vmatpush3.msra.mxu1 %v775_v59 }
 0x12b   : > { %1316 = vmatprep.subr.mxu1 %v1655_v0 }
 0x12c   : > { %1317 = vmatpush3.msra.mxu1 %v774_v60 }
 0x12d   : > { %1318 = vmatprep.subr.mxu1 %v1655_v0 }
 0x12e   : > { %1319 = vmatpush3.msra.mxu1 %v773_v61  ;;  %v1115_v61 = vld [vmem:[%s2037_s10] ss:$0 sm:$0xff] }
 0x12f   : > { %1320 = vmatprep.subr.mxu1 %v1655_v0 }
 0x130   : > { %1321 = vmatpush3.msra.mxu1 %v772_v62 }
 0x131   : > { %1322 = vmatprep.subr.mxu1 %v1655_v0 }
 0x132   : > { %1323 = vmatpush3.msra.mxu1 %v771_v63 }
 0x133   : > { %1324 = vmatprep.subr.mxu1 %v1655_v0 }
 0x134   : > { %1325 = vmatpush3.msra.mxu1 %v770_v1 }
 0x135   : > { %1326 = vmatprep.subr.mxu1 %v1655_v0 }
 0x136   : > { %1327 = vmatpush3.msra.mxu1 %v769_v2 }
 0x137   : > { %1328 = vmatprep.subr.mxu1 %v1655_v0 }
 0x138   : > { %1329 = vmatpush3.msra.mxu1 %v768_v16 }
 0x139   : > { %1330 = vmatprep.subr.mxu1 %v1655_v0 }
 0x13a   : > { %1331 = vmatpush3.msra.mxu1 %v767_v17 }
 0x13b   : > { %1332 = vmatprep.subr.mxu1 %v1655_v0 }
 0x13c   : > { %1333 = vmatpush3.msra.mxu1 %v766_v18 }
 0x1dd   : > { %v643_v4 = vpop.f32.mrf.mxu1 }
 0x1de   : > { %v644_v5 = vadd.f32 %v1112_v3, %v643_v4 }
 0x1df   : > { %v1254_v6 = vpop.f32.mrf.mxu1 }
 0x1e0   : > { %v657_v7 = vmax.f32 %v644_v5, 0.0 }
 0x1e1   : > { %v648_v8 = vpop.f32.mrf.mxu1 }
 0x1e2   : > { %v649_v9 = vadd.f32 %v1112_v3, %v648_v8  ;;  %1294 = vmatmul.mubr.f32.vlgmr.msra.gmra.mxu0 %v657_v7 }
 0x1e3   : > { %v1257_v10 = vpop.f32.mrf.mxu1  ;;  %1296 = vmatprep.mubr.msk.f32.mxu0 %vm1656_vm0, %v1655_v0  ;;  %1344 = vmatpush3.msra.mxu0 %v887_v19 }
 0x1e4   : > { %v658_v11 = vmax.f32 %v649_v9, 0.0  ;;  %1345 = vmatprep.subr.mxu0 %v1655_v0 }
 0x1e5   : > { %v653_v12 = vpop.f32.mrf.mxu1  ;;  %1346 = vmatpush3.msra.mxu0 %v886_v20 }
 0x1e6   : > { %v654_v13 = vadd.f32 %v1112_v3, %v653_v12  ;;  %1297 = vmatmul.mubr.f32.gmra.mxu0 %v658_v11  ;;  %1347 = vmatprep.subr.mxu0 %v1655_v0 }
 0x1e7   : > { %v1260_v14 = vpop.f32.mrf.mxu1  ;;  %1299 = vmatprep.mubr.msk.f32.mxu0 %vm1656_vm0, %v1655_v0  ;;  %1348 = vmatpush3.msra.mxu0 %v885_v21 }
 0x1e8   : > { %v659_v15 = vmax.f32 %v654_v13, 0.0  ;;  %1349 = vmatprep.subr.mxu0 %v1655_v0 }
 0x1e9   : > { %1350 = vmatpush3.msra.mxu0 %v884_v22 }
 0x1ea   : > { %1300 = vmatmul.mubr.f32.gmra.mxu0 %v659_v15  ;;  %1351 = vmatprep.subr.mxu0 %v1655_v0 }
 0x1eb   : > { %1375 = vmatprep.mubr.msk.f32.mxu0 %vm1656_vm0, %v1655_v0  ;;  %1352 = vmatpush3.msra.mxu0 %v883_v23 }
 0x1ec   : > { %1353 = vmatprep.subr.mxu0 %v1655_v0 }
 0x1ed   : > { %1354 = vmatpush3.msra.mxu0 %v882_v24 }
 0x1ee   : > { %1355 = vmatprep.subr.mxu0 %v1655_v0 }
 0x1ef   : > { %1356 = vmatpush3.msra.mxu0 %v881_v25 }
 0x1f0   : > { %1357 = vmatprep.subr.mxu0 %v1655_v0 }
 0x1f1   : > { %1358 = vmatpush3.msra.mxu0 %v880_v26 }
 0x1f2   : > { %1359 = vmatprep.subr.mxu0 %v1655_v0 }
 0x1f3   : > { %1360 = vmatpush3.msra.mxu0 %v879_v27 }
 0x1f4   : > { %1361 = vmatprep.subr.mxu0 %v1655_v0 }
 0x1f5   : > { %1362 = vmatpush3.msra.mxu0 %v878_v28 }
 0x1f6   : > { %1363 = vmatprep.subr.mxu0 %v1655_v0 }
 0x1f7   : > { %1364 = vmatpush3.msra.mxu0 %v877_v29 }
 0x1f8   : > { %1365 = vmatprep.subr.mxu0 %v1655_v0 }
 0x1f9   : > { %1366 = vmatpush3.msra.mxu0 %v876_v30 }
 0x1fa   : > { %1367 = vmatprep.subr.mxu0 %v1655_v0 }
 0x1fb   : > { %1368 = vmatpush3.msra.mxu0 %v875_v31 }
 0x1fc   : > { %1369 = vmatprep.subr.mxu0 %v1655_v0 }
 0x1fd   : > { %1370 = vmatpush3.msra.mxu0 %v874_v45 }
 0x1fe   : > { %1371 = vmatprep.subr.mxu0 %v1655_v0 }
 0x1ff   : > { %1372 = vmatpush3.msra.mxu0 %v873_v46 }
 0x200   : > { %1373 = vmatprep.subr.mxu0 %v1655_v0 }
 0x201   : > { %1374 = vmatpush3.msra.mxu0 %v872_v47 }
 0x2a2   : > { %v749_v33 = vpop.f32.mrf.mxu0 }
 0x2a3   : > { %v750_v34 = vadd.f32 %v1113_v32, %v749_v33 }
 0x2a4   : > { %v1295_v35 = vpop.f32.mrf.mxu0 }
 0x2a5   : > { %v763_v36 = vmax.f32 %v750_v34, 0.0 }
 0x2a6   : > { %v754_v37 = vpop.f32.mrf.mxu0 }
 0x2a7   : > { %v755_v38 = vadd.f32 %v1113_v32, %v754_v37  ;;  %1335 = vmatmul.mubr.f32.vlgmr.msra.gmra.mxu1 %v763_v36 }
 0x2a8   : > { %v1298_v39 = vpop.f32.mrf.mxu0  ;;  %1337 = vmatprep.mubr.msk.f32.mxu1 %vm1656_vm0, %v1655_v0 }
 0x2a9   : > { %v764_v40 = vmax.f32 %v755_v38, 0.0 }
 0x2aa   : > { %v759_v41 = vpop.f32.mrf.mxu0 }
 0x2ab   : > { %v760_v42 = vadd.f32 %v1113_v32, %v759_v41  ;;  %1338 = vmatmul.mubr.f32.gmra.mxu1 %v764_v40 }
 0x2ac   : > { %v1301_v43 = vpop.f32.mrf.mxu0  ;;  %1340 = vmatprep.mubr.msk.f32.mxu1 %vm1656_vm0, %v1655_v0 }
 0x2ad   : > { %v765_v44 = vmax.f32 %v760_v42, 0.0 }
 0x2af   : > { %1341 = vmatmul.mubr.f32.gmra.mxu1 %v765_v44 }
 0x367   : > { %v855_v49 = vpop.f32.mrf.mxu1 }
 0x368   : > { %v856_v50 = vadd.f32 %v1114_v48, %v855_v49 }
 0x369   : > { %v1336_v51 = vpop.f32.mrf.mxu1 }
 0x36a   : > { %v869_v52 = vmax.f32 %v856_v50, 0.0 }
 0x36b   : > { %v860_v53 = vpop.f32.mrf.mxu1 }
 0x36c   : > { %v861_v54 = vadd.f32 %v1114_v48, %v860_v53  ;;  %1376 = vmatmul.mubr.f32.vlgmr.msra.gmra.mxu0 %v869_v52 }
 0x36d   : > { %v1339_v55 = vpop.f32.mrf.mxu1  ;;  %1378 = vmatprep.mubr.msk.f32.mxu0 %vm1656_vm0, %v1655_v0 }
 0x36e   : > { %v870_v56 = vmax.f32 %v861_v54, 0.0 }
 0x36f   : > { %v865_v57 = vpop.f32.mrf.mxu1 }
 0x370   : > { %v866_v58 = vadd.f32 %v1114_v48, %v865_v57  ;;  %1379 = vmatmul.mubr.f32.gmra.mxu0 %v870_v56 }
 0x371   : > { %v1342_v59 = vpop.f32.mrf.mxu1  ;;  %1381 = vmatprep.mubr.msk.f32.mxu0 %vm1656_vm0, %v1655_v0 }
 0x372   : > { %v871_v60 = vmax.f32 %v866_v58, 0.0 }
 0x374   : > { %1382 = vmatmul.mubr.f32.gmra.mxu0 %v871_v60 }
 0x42c   : > { %v961_v62 = vpop.f32.mrf.mxu0 }
 0x42d   : > { %v962_v63 = vadd.f32 %v1115_v61, %v961_v62 }
 0x42e   : > { %v1377_v1 = vpop.f32.mrf.mxu0 }
 0x42f   : > { %975 = vst [vmem:[%s439_s13] sm:$0xff] %v962_v63 }
 0x430   : > { %v966_v2 = vpop.f32.mrf.mxu0 }
 0x431   : > { %v967_v3 = vadd.f32 %v1115_v61, %v966_v2 }
 0x432   : > { %v1380_v4 = vpop.f32.mrf.mxu0 }
 0x433   : > { %976 = vst [vmem:[%s439_s13 + $0x8] sm:$0xff] %v967_v3 }
 0x434   : > { %v971_v0 = vpop.f32.mrf.mxu0 }
 0x435   : > { %v972_v5 = vadd.f32 %v1115_v61, %v971_v0 }
 0x436   : > { %v1383_v6 = vpop.f32.mrf.mxu0 }
 0x437   : > { %977 = vst [vmem:[%s439_s13 + $0x10] sm:$0xff] %v972_v5 }
 0x438   : > { %1588 = shalt.err (!%p1585_p11)
}
 0x439   : > { %s1589_s16 = scalar_lea.hbm %s1985_s26, 384  ;;  %s1593_s25 = scalar_lea.hbm %s2038_s11, 768 }
 0x43a   : > { %p1590_p0 = scmp.ne.s32.totalorder %s1985_s26, %s1589_s16  ;;  %p1594_p3 = scmp.lt.s32.totalorder %s1985_s26, %s2038_s11 }
 0x43b   : > { %p1595_p10 = scmp.lt.s32.totalorder %s1593_s25, %s1589_s16 }
 0x43c   : > { %p1591_p2 = pnand %p1590_p0, %p1758_p5 }
 0x43d   : > { %p1596_p9 = por %p1595_p10, %p1594_p3 }
 0x43e   : > { %p1592_p1 = pneg %p1591_p2 }
 0x440   : > { %p1597_p12 = pnand %p1596_p9, %p1592_p1 }
 0x442   : > { %1600 = shalt.err (!%p1597_p12)
}
 0x443   : > { %s1658_s21 = smov 128   ;;  %s1659_s14 = smov 8  }
 0x444   : > { %1401 = dma.vmem_to_hbm [thread:$0]  (%p1758_p5), %s1980_s30, 384, %s1985_s26, %s1987_s15, %s1658_s21, %s1658_s21, %s1659_s14  }
 0x445 PF: > { %p1428_p13 = scmp.ge.s32.totalorder %s1647_s20, 2  ;;  %s1007_s22 = sand.u32 1, %s1635_s17  }
 0x446   : > { %s1008_s24 = scalar_lea.sflag [#allocation4], %s1007_s22 }
 0x447   : > { %p1417_p4 = pnand %p1428_p13, %p1762_p6 }
 0x449   : > { %p1418_p7 = pneg %p1417_p4 }
 0x44b   : > { %1630 = dma.done.wait (%p1418_p7), %s1008_s24, 384  }
 0x44c   : > { %1632 = vsyncadd (%p1418_p7), %s1008_s24, 4294966912  ;;  %s2046_s16 = sld [smem:[#allocation15_spill]]  ;;  %p24_p8 = scmp.ge.s32.totalorder %s1745_s23, 4  }
 0x44d   : > { %s2047_s19 = sld [smem:[#allocation16_spill]]  ;;  %s2048_s17 = smov %s1639_s18 }
 0x44e   : > { %s2050_s20 = smov %s1745_s23  ;;  %26 = sbr.rel (!%p24_p8) target bundleno = 6 (0x6), region = 116 }
 0x452   : > { %s2049_s18 = smov %s2046_s16 }
 0x453   :  { %1013 = vsyncpa [#allocation3], 1 }
 0x454   :  { %1015 = vsyncpa [#allocation3 + $0x1], 1 }
 0x455   :  { %1016 = vsyncpa [#allocation6], 1 }
 0x456   :  { %1017 = vsyncpa [#allocation9], 1 }
 0x457   :  { %1018 = vsyncpa [#allocation4], 1 }
 0x458   :  { %1020 = vsyncpa [#allocation4 + $0x1], 1 }

</bundles_post_ra>
